<compile_context>
chip_gen: v6e
topology: v6e:2x2x1
jax: 0.10.0
libtpu: 0.0.40
codegen_flags: <defaults>
</compile_context>

<pallas_src>
import functools

import jax
import jax.numpy as jnp
from jax import lax
from jax.experimental import pallas as pl
from jax.experimental.pallas import tpu as pltpu


def _round_up(x: int, m: int) -> int:
    return ((x + m - 1) // m) * m


def _cdiv(a: int, b: int) -> int:
    return (a + b - 1) // b


def bow_mlp_kernel(x_ref, w1_ref, b1_ref, w2_ref, b2_ref, o_ref, acc_ref, *,
                   k_rem: int):
    """Grid = (batch tiles, K tiles).  Reduction over K (vocab dim) with an
    f32 VMEM accumulator; bias + ReLU + fc2 + bias fused into the last K step."""
    k = pl.program_id(1)
    nk = pl.num_programs(1)

    @pl.when(k == 0)
    def _init():
        acc_ref[...] = jnp.zeros_like(acc_ref)

    x_blk = x_ref[...]
    w1_blk = w1_ref[...]
    if k_rem:
        # D % block_k != 0: the last K tile reads past the end of x / W1
        # (contents unspecified) -- zero those lanes before contracting.
        bk = x_blk.shape[1]
        valid = jnp.where(k == nk - 1, k_rem, bk)
        keep = lax.broadcasted_iota(jnp.int32, (1, bk), 1) < valid
        x_blk = jnp.where(keep, x_blk, 0).astype(x_blk.dtype)
        w1_blk = jnp.where(keep, w1_blk, 0).astype(w1_blk.dtype)
    if x_blk.dtype != w1_blk.dtype:
        # bf16-weight path: convert x in-VMEM (no extra HBM pass over x).
        x_blk = x_blk.astype(w1_blk.dtype)

    # Partial fc1: x_blk [Bb, Kb] contracted with w1_blk [H, Kb] on K -> [Bb, H].
    # W1 stays in PyTorch [out, in] layout (lane-dense blocks); only the small
    # [H, Kb] operand may need an in-VMEM transpose to feed the MXU.
    acc_ref[...] += lax.dot_general(
        x_blk, w1_blk,
        dimension_numbers=(((1,), (1,)), ((), ())),
        preferred_element_type=jnp.float32)

    @pl.when(k == nk - 1)
    def _finalize():
        h = jnp.maximum(acc_ref[...] + b1_ref[...].astype(jnp.float32), 0.0)
        # fc2: h [Bb, H] contracted with W2 [Opad, H] on H -> [Bb, Opad].
        y = lax.dot_general(
            h.astype(w2_ref.dtype), w2_ref[...],
            dimension_numbers=(((1,), (1,)), ((), ())),
            preferred_element_type=jnp.float32)
        o_ref[...] = (y + b2_ref[...].astype(jnp.float32)).astype(o_ref.dtype)


def bow_classifier_forward(x, w1, b1, w2, b2, *, param_dtype=None,
                           _force_block_b=None, _force_block_k=None):
    """BoWClassifier forward:  relu(x @ w1.T + b1) @ w2.T + b2.

    x: [B, D]; w1: [H, D] (PyTorch layout); b1: [H]; w2: [O, H]; b2: [O].
    Returns float32 [B, O].  `param_dtype` (e.g. jnp.bfloat16) optionally
    narrows the weight storage; x itself is converted inside the kernel."""
    B, D = x.shape
    H, Dw = w1.shape
    O, Hw = w2.shape
    assert Dw == D and Hw == H

    if param_dtype is not None:
        w1 = w1.astype(param_dtype)       # one-time weight cast only
        w2 = w2.astype(param_dtype)
    b1 = b1.astype(jnp.float32)
    b2 = b2.astype(jnp.float32)

    x_esize = jnp.dtype(x.dtype).itemsize
    w_esize = jnp.dtype(w1.dtype).itemsize
    O_pad = _round_up(O, 128)             # lane-dense (unmasked) output stores

    # ---- per-generation VMEM budget (64 MiB on v7x, 128 MiB on v5e/v6e) ----
    try:
        vmem_cap = int(pltpu.get_tpu_info().vmem_capacity_bytes)
    except Exception:
        vmem_cap = 64 * 1024 * 1024       # conservative fallback (v7x-sized)
    budget = vmem_cap * 5 // 8            # tile-footprint target
    vmem_limit = vmem_cap * 3 // 4        # scoped-VMEM limit handed to Mosaic

    def footprint(bb, bk):
        x_buf = 2 * bb * bk * x_esize             # double-buffered x stream
        w1_buf = 2 * H * bk * w_esize             # counted 2x even if resident
        w2_buf = 2 * O_pad * H * w_esize
        bias_buf = 4 * 8 * 128 * 4
        acc_buf = bb * H * 4
        out_buf = 2 * bb * O_pad * 4
        return x_buf + w1_buf + w2_buf + bias_buf + acc_buf + out_buf

    # ---- batch tile: ~256 rows, minimal tail waste; >=2 tiles when B >= 16
    # so the "parallel" batch axis can feed both v7x TensorCores. -------------
    if _force_block_b is not None:
        block_b = _force_block_b
    elif B < 16:
        block_b = B                        # single full-extent tile
    else:
        n_b_target = max(2, _cdiv(B, 256))
        block_b = _round_up(_cdiv(B, n_b_target), 8)
        if block_b >= B:
            block_b = B

    # ---- K tile: collapse the reduction (block_k = D, one K step, W1 read
    # once) whenever it fits the VMEM budget; otherwise the largest
    # 128-multiple tile that fits, with the K tail masked in-kernel. ----------
    if _force_block_k is not None:
        block_k = _force_block_k
    else:
        while True:
            if footprint(block_b, D) <= budget:
                block_k = D
                break
            per_k_byte = 2 * (block_b * x_esize + H * w_esize)
            bk = (budget - footprint(block_b, 0)) // per_k_byte // 128 * 128
            if bk >= 128:
                block_k = min(int(bk), _round_up(D, 128))
                break
            if block_b <= 8:
                block_k = 128              # last resort
                break
            block_b = max(8, _round_up(block_b // 2, 8))

    n_b = _cdiv(B, block_b)
    n_k = _cdiv(D, block_k)
    k_rem = D % block_k                    # 0 when block_k divides D (or == D)
    grid = (n_b, n_k)

    # Tiny O-side padding only (W2/b2 are [O, H]/[O]); x is never padded or
    # rewritten in the wrapper -- batch/K tails are handled in-kernel.
    if O_pad != O:
        w2 = jnp.pad(w2, ((0, O_pad - O), (0, 0)))
        b2 = jnp.pad(b2, (0, O_pad - O))
    b1_2d = b1.reshape(1, H)
    b2_2d = b2.reshape(1, O_pad)

    cost = pl.CostEstimate(
        flops=2 * B * D * H + 2 * B * H * O_pad,
        transcendentals=0,
        bytes_accessed=(B * D * x_esize + H * D * w_esize
                        + O_pad * H * w_esize + B * O_pad * 4
                        + (H + O_pad) * 4),
    )

    kernel = functools.partial(bow_mlp_kernel, k_rem=k_rem)
    out_shape = jax.ShapeDtypeStruct((B, O_pad), jnp.float32)

    def build(single_buffer_consts):
        def const_spec(shape):
            if single_buffer_consts:
                return pl.BlockSpec(shape, lambda b, k: (0, 0),
                                    pipeline_mode=pl.Buffered(1))
            return pl.BlockSpec(shape, lambda b, k: (0, 0))

        if n_k == 1 and single_buffer_consts:
            # Reduction collapsed -> W1's block index is constant; a single
            # buffer halves its VMEM cost and it is DMA'd exactly once.
            w1_spec = pl.BlockSpec((H, block_k), lambda b, k: (0, 0),
                                   pipeline_mode=pl.Buffered(1))
        else:
            w1_spec = pl.BlockSpec((H, block_k), lambda b, k: (0, k))

        return pl.pallas_call(
            kernel,
            out_shape=out_shape,
            grid_spec=pltpu.PrefetchScalarGridSpec(
                num_scalar_prefetch=0,
                grid=grid,
                in_specs=[
                    pl.BlockSpec((block_b, block_k), lambda b, k: (b, k)),  # x
                    w1_spec,                                                # W1
                    const_spec((1, H)),                                     # b1
                    const_spec((O_pad, H)),                                 # W2
                    const_spec((1, O_pad)),                                 # b2
                ],
                out_specs=pl.BlockSpec((block_b, O_pad), lambda b, k: (b, 0)),
                scratch_shapes=[pltpu.VMEM((block_b, H), jnp.float32)],
            ),
            compiler_params=pltpu.CompilerParams(
                dimension_semantics=("parallel", "arbitrary"),
                vmem_limit_bytes=int(vmem_limit),
            ),
            cost_estimate=cost,
        )

    try:
        out = build(single_buffer_consts=True)(x, w1, b1_2d, w2, b2_2d)
    except Exception:
        # Fallback if this jax build rejects BlockSpec(pipeline_mode=Buffered(1)):
        # identical kernel with default double-buffered constant operands.
        out = build(single_buffer_consts=False)(x, w1, b1_2d, w2, b2_2d)

    return out[:, :O] if O_pad != O else out


if __name__ == "__main__":
    batch, input_dim, hidden_dim, output_dim = 8, 1024, 32, 16

    key = jax.random.PRNGKey(0)
    kx, kw1, kb1, kw2, kb2, kx2 = jax.random.split(key, 6)

    x = jax.random.normal(kx, (batch, input_dim), dtype=jnp.float32)

    # Deterministic init mimicking nn.Linear default (uniform +/- 1/sqrt(fan_in)).
    bound1 = 1.0 / (input_dim ** 0.5)
    w1 = jax.random.uniform(kw1, (hidden_dim, input_dim), jnp.float32,
                            -bound1, bound1)
    b1 = jax.random.uniform(kb1, (hidden_dim,), jnp.float32, -bound1, bound1)
    bound2 = 1.0 / (hidden_dim ** 0.5)
    w2 = jax.random.uniform(kw2, (output_dim, hidden_dim), jnp.float32,
                            -bound2, bound2)
    b2 = jax.random.uniform(kb2, (output_dim,), jnp.float32, -bound2, bound2)

    ref = jnp.maximum(x @ w1.T + b1, 0.0) @ w2.T + b2

    # 1) f32 path (collapsed reduction: single K step, W1 DMA'd once).
    out = jax.block_until_ready(bow_classifier_forward(x, w1, b1, w2, b2))
    assert out.shape == (batch, output_dim)
    err = float(jnp.max(jnp.abs(out - ref)))
    assert jnp.allclose(out, ref, atol=1e-3, rtol=1e-3), f"f32 mismatch {err}"

    # 2) bf16-weight path (f32 accumulation; x converted inside the kernel).
    out_bf16 = jax.block_until_ready(
        bow_classifier_forward(x, w1, b1, w2, b2, param_dtype=jnp.bfloat16))
    assert out_bf16.shape == (batch, output_dim)
    err = float(jnp.max(jnp.abs(out_bf16 - ref)))
    assert jnp.allclose(out_bf16, ref, atol=5e-2, rtol=5e-2), f"bf16 mismatch {err}"

    # 3) Exercise the tiled-reduction path: non-dividing D (in-kernel K-tail
    #    masking) and a ragged batch tail -- no wrapper-side padding of x.
    B3, D3 = 10, 1000
    x3 = jax.random.normal(kx2, (B3, D3), dtype=jnp.float32)
    bound3 = 1.0 / (D3 ** 0.5)
    w1_3 = jax.random.uniform(kw1, (hidden_dim, D3), jnp.float32,
                              -bound3, bound3)
    ref3 = jnp.maximum(x3 @ w1_3.T + b1, 0.0) @ w2.T + b2
    out3 = jax.block_until_ready(
        bow_classifier_forward(x3, w1_3, b1, w2, b2,
                               _force_block_b=8, _force_block_k=256))
    assert out3.shape == (B3, output_dim)
    err = float(jnp.max(jnp.abs(out3 - ref3)))
    assert jnp.allclose(out3, ref3, atol=1e-3, rtol=1e-3), f"tail mismatch {err}"

    print("KERNEL_OK")
</pallas_src>

<mosaic_0001>
module attributes {stable_mosaic.version = 11 : i64} {
  func.func @bow_mlp_kernel(%arg0: i32, %arg1: i32, %arg2: memref<8x1024xf32, #tpu.memory_space<vmem>>, %arg3: memref<32x1024xf32, #tpu.memory_space<vmem>>, %arg4: memref<1x32xf32, #tpu.memory_space<vmem>>, %arg5: memref<128x32xf32, #tpu.memory_space<vmem>>, %arg6: memref<1x128xf32, #tpu.memory_space<vmem>>, %arg7: memref<8x128xf32, #tpu.memory_space<vmem>>, %arg8: memref<8x32xf32, #tpu.memory_space<vmem>>) attributes {dimension_semantics = [#tpu.dimension_semantics<parallel>, #tpu.dimension_semantics<arbitrary>], iteration_bounds = array<i64: 1, 1>, scalar_prefetch = 0 : i64, scratch_operands = 1 : i64, tpu.core_type = #tpu.core_type<tc>, window_params = [{transform_indices = @transform_0, window_bounds = array<i64: 8, 1024>}, {pipeline_mode = #tpu.pipeline_mode<synchronous>, transform_indices = @transform_1, window_bounds = array<i64: 32, 1024>}, {pipeline_mode = #tpu.pipeline_mode<synchronous>, transform_indices = @transform_2, window_bounds = array<i64: 1, 32>}, {pipeline_mode = #tpu.pipeline_mode<synchronous>, transform_indices = @transform_3, window_bounds = array<i64: 128, 32>}, {pipeline_mode = #tpu.pipeline_mode<synchronous>, transform_indices = @transform_4, window_bounds = array<i64: 1, 128>}, {transform_indices = @transform_5, window_bounds = array<i64: 8, 128>}]} {
    %c0_i32 = arith.constant 0 : i32
    %0 = arith.cmpi eq, %arg1, %c0_i32 : i32
    %1 = arith.extui %0 : i1 to i32
    %c0_i32_0 = arith.constant 0 : i32
    %2 = arith.cmpi ne, %1, %c0_i32_0 : i32
    scf.if %2 {
      %cst_10 = arith.constant 0.000000e+00 : f32
      %12 = vector.broadcast %cst_10 : f32 to vector<8x32xf32>
      %c0_11 = arith.constant 0 : index
      %c0_12 = arith.constant 0 : index
      %13 = vector.load %arg8[%c0_11, %c0_12] : memref<8x32xf32, #tpu.memory_space<vmem>>, vector<8x32xf32>
      tpu.vector_store %arg8[%c0_11, %c0_12], %12 {strides = array<i32>} : memref<8x32xf32, #tpu.memory_space<vmem>>, vector<8x32xf32>,
    } else {
    }
    %c0 = arith.constant 0 : index
    %c0_1 = arith.constant 0 : index
    %3 = vector.load %arg2[%c0, %c0_1] : memref<8x1024xf32, #tpu.memory_space<vmem>>, vector<8x1024xf32>
    %c0_2 = arith.constant 0 : index
    %c0_3 = arith.constant 0 : index
    %4 = vector.load %arg3[%c0_2, %c0_3] : memref<32x1024xf32, #tpu.memory_space<vmem>>, vector<32x1024xf32>
    %c0_4 = arith.constant 0 : index
    %c0_5 = arith.constant 0 : index
    %5 = vector.load %arg8[%c0_4, %c0_5] : memref<8x32xf32, #tpu.memory_space<vmem>>, vector<8x32xf32>
    %cst = arith.constant dense<0.000000e+00> : vector<8x32xf32>
    %6 = tpu.matmul %3, %4, %cst {dimension_numbers = #tpu.dot_dimension_numbers<[1], [1], [0], [0], [0, 0, 1, 0], [], []>} : vector<8x1024xf32>, vector<32x1024xf32>, vector<8x32xf32> -> vector<8x32xf32>
    %7 = arith.addf %5, %6 : vector<8x32xf32>
    %c0_6 = arith.constant 0 : index
    %c0_7 = arith.constant 0 : index
    %8 = vector.load %arg8[%c0_6, %c0_7] : memref<8x32xf32, #tpu.memory_space<vmem>>, vector<8x32xf32>
    tpu.vector_store %arg8[%c0_6, %c0_7], %7 {strides = array<i32>} : memref<8x32xf32, #tpu.memory_space<vmem>>, vector<8x32xf32>,
    %c0_i32_8 = arith.constant 0 : i32
    %9 = arith.cmpi eq, %arg1, %c0_i32_8 : i32
    %10 = arith.extui %9 : i1 to i32
    %c0_i32_9 = arith.constant 0 : i32
    %11 = arith.cmpi ne, %10, %c0_i32_9 : i32
    scf.if %11 {
      %c0_10 = arith.constant 0 : index
      %c0_11 = arith.constant 0 : index
      %12 = vector.load %arg8[%c0_10, %c0_11] : memref<8x32xf32, #tpu.memory_space<vmem>>, vector<8x32xf32>
      %c0_12 = arith.constant 0 : index
      %c0_13 = arith.constant 0 : index
      %13 = vector.load %arg4[%c0_12, %c0_13] : memref<1x32xf32, #tpu.memory_space<vmem>>, vector<1x32xf32>
      %14 = vector.broadcast %13 : vector<1x32xf32> to vector<8x32xf32>
      %15 = arith.addf %12, %14 : vector<8x32xf32>
      %cst_14 = arith.constant 0.000000e+00 : f32
      %16 = vector.broadcast %cst_14 : f32 to vector<8x32xf32>
      %17 = arith.maximumf %15, %16 : vector<8x32xf32>
      %c0_15 = arith.constant 0 : index
      %c0_16 = arith.constant 0 : index
      %18 = vector.load %arg5[%c0_15, %c0_16] : memref<128x32xf32, #tpu.memory_space<vmem>>, vector<128x32xf32>
      %cst_17 = arith.constant dense<0.000000e+00> : vector<8x128xf32>
      %19 = tpu.matmul %17, %18, %cst_17 {dimension_numbers = #tpu.dot_dimension_numbers<[1], [1], [0], [0], [0, 0, 1, 0], [], []>} : vector<8x32xf32>, vector<128x32xf32>, vector<8x128xf32> -> vector<8x128xf32>
      %c0_18 = arith.constant 0 : index
      %c0_19 = arith.constant 0 : index
      %20 = vector.load %arg6[%c0_18, %c0_19] : memref<1x128xf32, #tpu.memory_space<vmem>>, vector<1x128xf32>
      %21 = vector.broadcast %20 : vector<1x128xf32> to vector<8x128xf32>
      %22 = arith.addf %19, %21 : vector<8x128xf32>
      %c0_20 = arith.constant 0 : index
      %c0_21 = arith.constant 0 : index
      %23 = vector.load %arg7[%c0_20, %c0_21] : memref<8x128xf32, #tpu.memory_space<vmem>>, vector<8x128xf32>
      tpu.vector_store %arg7[%c0_20, %c0_21], %22 {strides = array<i32>} : memref<8x128xf32, #tpu.memory_space<vmem>>, vector<8x128xf32>,
    } else {
    }
    return
  }
  func.func @transform_0(%arg0: i32, %arg1: i32) -> (i32, i32) {
    %c0_i32 = arith.constant 0 : i32
    return %arg0, %arg1 : i32, i32
  }
  func.func @transform_1(%arg0: i32, %arg1: i32) -> (i32, i32) {
    %c0_i32 = arith.constant 0 : i32
    %c0_i32_0 = arith.constant 0 : i32
    %c0_i32_1 = arith.constant 0 : i32
    return %c0_i32, %c0_i32_0 : i32, i32
  }
  func.func @transform_2(%arg0: i32, %arg1: i32) -> (i32, i32) {
    %c0_i32 = arith.constant 0 : i32
    %c0_i32_0 = arith.constant 0 : i32
    %c0_i32_1 = arith.constant 0 : i32
    return %c0_i32, %c0_i32_0 : i32, i32
  }
  func.func @transform_3(%arg0: i32, %arg1: i32) -> (i32, i32) {
    %c0_i32 = arith.constant 0 : i32
    %c0_i32_0 = arith.constant 0 : i32
    %c0_i32_1 = arith.constant 0 : i32
    return %c0_i32, %c0_i32_0 : i32, i32
  }
  func.func @transform_4(%arg0: i32, %arg1: i32) -> (i32, i32) {
    %c0_i32 = arith.constant 0 : i32
    %c0_i32_0 = arith.constant 0 : i32
    %c0_i32_1 = arith.constant 0 : i32
    return %c0_i32, %c0_i32_0 : i32, i32
  }
  func.func @transform_5(%arg0: i32, %arg1: i32) -> (i32, i32) {
    %c0_i32 = arith.constant 0 : i32
    %c0_i32_0 = arith.constant 0 : i32
    return %arg0, %c0_i32 : i32, i32
  }
}

module attributes {stable_mosaic.version = 11 : i64} {
  func.func @bow_mlp_kernel(%arg0: i32, %arg1: i32, %arg2: memref<8x1024xf32, #tpu.memory_space<vmem>>, %arg3: memref<32x1024xf32, #tpu.memory_space<vmem>>, %arg4: memref<1x32xf32, #tpu.memory_space<vmem>>, %arg5: memref<128x32xf32, #tpu.memory_space<vmem>>, %arg6: memref<1x128xf32, #tpu.memory_space<vmem>>, %arg7: memref<8x128xf32, #tpu.memory_space<vmem>>, %arg8: memref<8x32xf32, #tpu.memory_space<vmem>>) attributes {dimension_semantics = [#tpu.dimension_semantics<parallel>, #tpu.dimension_semantics<arbitrary>], iteration_bounds = array<i64: 1, 1>, scalar_prefetch = 0 : i64, scratch_operands = 1 : i64, tpu.core_type = #tpu.core_type<tc>, window_params = [{transform_indices = @transform_0, window_bounds = array<i64: 8, 1024>}, {transform_indices = @transform_1, window_bounds = array<i64: 32, 1024>}, {pipeline_mode = #tpu.pipeline_mode<synchronous>, transform_indices = @transform_2, window_bounds = array<i64: 1, 32>}, {pipeline_mode = #tpu.pipeline_mode<synchronous>, transform_indices = @transform_3, window_bounds = array<i64: 128, 32>}, {pipeline_mode = #tpu.pipeline_mode<synchronous>, transform_indices = @transform_4, window_bounds = array<i64: 1, 128>}, {transform_indices = @transform_5, window_bounds = array<i64: 8, 128>}]} {
    %c0_i32 = arith.constant 0 : i32
    %0 = arith.cmpi eq, %arg1, %c0_i32 : i32
    %1 = arith.extui %0 : i1 to i32
    %c0_i32_0 = arith.constant 0 : i32
    %2 = arith.cmpi ne, %1, %c0_i32_0 : i32
    scf.if %2 {
      %cst_10 = arith.constant 0.000000e+00 : f32
      %12 = vector.broadcast %cst_10 : f32 to vector<8x32xf32>
      %c0_11 = arith.constant 0 : index
      %c0_12 = arith.constant 0 : index
      %13 = vector.load %arg8[%c0_11, %c0_12] : memref<8x32xf32, #tpu.memory_space<vmem>>, vector<8x32xf32>
      tpu.vector_store %arg8[%c0_11, %c0_12], %12 {strides = array<i32>} : memref<8x32xf32, #tpu.memory_space<vmem>>, vector<8x32xf32>,
    } else {
    }
    %c0 = arith.constant 0 : index
    %c0_1 = arith.constant 0 : index
    %3 = vector.load %arg2[%c0, %c0_1] : memref<8x1024xf32, #tpu.memory_space<vmem>>, vector<8x1024xf32>
    %c0_2 = arith.constant 0 : index
    %c0_3 = arith.constant 0 : index
    %4 = vector.load %arg3[%c0_2, %c0_3] : memref<32x1024xf32, #tpu.memory_space<vmem>>, vector<32x1024xf32>
    %c0_4 = arith.constant 0 : index
    %c0_5 = arith.constant 0 : index
    %5 = vector.load %arg8[%c0_4, %c0_5] : memref<8x32xf32, #tpu.memory_space<vmem>>, vector<8x32xf32>
    %cst = arith.constant dense<0.000000e+00> : vector<8x32xf32>
    %6 = tpu.matmul %3, %4, %cst {dimension_numbers = #tpu.dot_dimension_numbers<[1], [1], [0], [0], [0, 0, 1, 0], [], []>} : vector<8x1024xf32>, vector<32x1024xf32>, vector<8x32xf32> -> vector<8x32xf32>
    %7 = arith.addf %5, %6 : vector<8x32xf32>
    %c0_6 = arith.constant 0 : index
    %c0_7 = arith.constant 0 : index
    %8 = vector.load %arg8[%c0_6, %c0_7] : memref<8x32xf32, #tpu.memory_space<vmem>>, vector<8x32xf32>
    tpu.vector_store %arg8[%c0_6, %c0_7], %7 {strides = array<i32>} : memref<8x32xf32, #tpu.memory_space<vmem>>, vector<8x32xf32>,
    %c0_i32_8 = arith.constant 0 : i32
    %9 = arith.cmpi eq, %arg1, %c0_i32_8 : i32
    %10 = arith.extui %9 : i1 to i32
    %c0_i32_9 = arith.constant 0 : i32
    %11 = arith.cmpi ne, %10, %c0_i32_9 : i32
    scf.if %11 {
      %c0_10 = arith.constant 0 : index
      %c0_11 = arith.constant 0 : index
      %12 = vector.load %arg8[%c0_10, %c0_11] : memref<8x32xf32, #tpu.memory_space<vmem>>, vector<8x32xf32>
      %c0_12 = arith.constant 0 : index
      %c0_13 = arith.constant 0 : index
      %13 = vector.load %arg4[%c0_12, %c0_13] : memref<1x32xf32, #tpu.memory_space<vmem>>, vector<1x32xf32>
      %14 = vector.broadcast %13 : vector<1x32xf32> to vector<8x32xf32>
      %15 = arith.addf %12, %14 : vector<8x32xf32>
      %cst_14 = arith.constant 0.000000e+00 : f32
      %16 = vector.broadcast %cst_14 : f32 to vector<8x32xf32>
      %17 = arith.maximumf %15, %16 : vector<8x32xf32>
      %c0_15 = arith.constant 0 : index
      %c0_16 = arith.constant 0 : index
      %18 = vector.load %arg5[%c0_15, %c0_16] : memref<128x32xf32, #tpu.memory_space<vmem>>, vector<128x32xf32>
      %cst_17 = arith.constant dense<0.000000e+00> : vector<8x128xf32>
      %19 = tpu.matmul %17, %18, %cst_17 {dimension_numbers = #tpu.dot_dimension_numbers<[1], [1], [0], [0], [0, 0, 1, 0], [], []>} : vector<8x32xf32>, vector<128x32xf32>, vector<8x128xf32> -> vector<8x128xf32>
      %c0_18 = arith.constant 0 : index
      %c0_19 = arith.constant 0 : index
      %20 = vector.load %arg6[%c0_18, %c0_19] : memref<1x128xf32, #tpu.memory_space<vmem>>, vector<1x128xf32>
      %21 = vector.broadcast %20 : vector<1x128xf32> to vector<8x128xf32>
      %22 = arith.addf %19, %21 : vector<8x128xf32>
      %c0_20 = arith.constant 0 : index
      %c0_21 = arith.constant 0 : index
      %23 = vector.load %arg7[%c0_20, %c0_21] : memref<8x128xf32, #tpu.memory_space<vmem>>, vector<8x128xf32>
      tpu.vector_store %arg7[%c0_20, %c0_21], %22 {strides = array<i32>} : memref<8x128xf32, #tpu.memory_space<vmem>>, vector<8x128xf32>,
    } else {
    }
    return
  }
  func.func @transform_0(%arg0: i32, %arg1: i32) -> (i32, i32) {
    %c0_i32 = arith.constant 0 : i32
    return %arg0, %arg1 : i32, i32
  }
  func.func @transform_1(%arg0: i32, %arg1: i32) -> (i32, i32) {
    %c0_i32 = arith.constant 0 : i32
    %c0_i32_0 = arith.constant 0 : i32
    return %c0_i32, %arg1 : i32, i32
  }
  func.func @transform_2(%arg0: i32, %arg1: i32) -> (i32, i32) {
    %c0_i32 = arith.constant 0 : i32
    %c0_i32_0 = arith.constant 0 : i32
    %c0_i32_1 = arith.constant 0 : i32
    return %c0_i32, %c0_i32_0 : i32, i32
  }
  func.func @transform_3(%arg0: i32, %arg1: i32) -> (i32, i32) {
    %c0_i32 = arith.constant 0 : i32
    %c0_i32_0 = arith.constant 0 : i32
    %c0_i32_1 = arith.constant 0 : i32
    return %c0_i32, %c0_i32_0 : i32, i32
  }
  func.func @transform_4(%arg0: i32, %arg1: i32) -> (i32, i32) {
    %c0_i32 = arith.constant 0 : i32
    %c0_i32_0 = arith.constant 0 : i32
    %c0_i32_1 = arith.constant 0 : i32
    return %c0_i32, %c0_i32_0 : i32, i32
  }
  func.func @transform_5(%arg0: i32, %arg1: i32) -> (i32, i32) {
    %c0_i32 = arith.constant 0 : i32
    %c0_i32_0 = arith.constant 0 : i32
    return %arg0, %c0_i32 : i32, i32
  }
}

</mosaic_0001>

<bundles_post_ra>
// kernel: tpu_custom_call.1
= control target key start
LH: loop header
LB: loop body
LE: loop exit
PB: predicated region body
PF: predicated region fallthrough
CT: control target
= control target key end

     0   :  { %10 = vsyncpa [#allocation4], 0  ;;  %s798_s0 = inlined_call_operand.vmem [shape: f32[8,1024], index: 0, kind: input, shape index: {}]   ;;  %s799_s1 = inlined_call_operand.hbm [shape: f32[32,1024], index: 1, kind: input, shape index: {}]   ;;  %s800_s2 = inlined_call_operand.vmem [shape: f32[1,32], index: 2, kind: input, shape index: {}]   ;;  %s801_s3 = inlined_call_operand.vmem [shape: f32[128,32], index: 3, kind: input, shape index: {}]   ;;  %s802_s4 = inlined_call_operand.vmem [shape: f32[1,128], index: 4, kind: input, shape index: {}]   ;;  %s803_s5 = inlined_call_operand.hbm [shape: f32[8,128], index: 5, kind: output, shape index: {}]  }
   0x1   :  { %11 = vsyncpa [#allocation5], 0  ;;  %s659_s18 = smov [#allocation3]  }
   0x2   :  { %s19_s19 = sshll.u32 %s659_s18, 4  ;;  %s20_s19 = int_to_ptr.vmem [resolvable:$true] %s19_s19 }
   0x3   :  { %s623_s20 = scalar_lea.vmem %s20_s19, 4096  ;;  %p628_p1 = scmp.lt.s32.totalorder %s20_s19, %s20_s19 }
   0x4   :  { %p624_p0 = scmp.ne.s32.totalorder %s20_s19, %s623_s20  ;;  %p629_p2 = scmp.lt.s32.totalorder %s623_s20, %s623_s20 }
   0x6   :  { %p630_p3 = por %p629_p2, %p628_p1 }
   0x8   :  { %p631_p4 = pnand %p630_p3, %p624_p0 }
   0xa   :  { %634 = shalt.err (!%p631_p4)
}
   0xb   :  { %s660_s21 = smov 1024   ;;  %s661_s22 = smov 64  }
   0xc   :  { %25 = dma.hbm_to_vmem [thread:$0]  %s799_s1, 4096, %s20_s19, [#allocation4], %s660_s21, %s660_s21, %s661_s22  }
   0xd   :  { %655 = dma.done.wait [#allocation4], 4096  }
   0xe   :  { %656 = vsyncadd [#allocation4], 4294963200  ;;  %v74_v0 = vld [vmem:[#allocation3 + $0xc8] sm:$0xff]  ;;  %v73_v1 = vld [vmem:[#allocation3 + $0xc0] sm:$0xff]  ;;  %v662_v40 = vmov 0.0   ;;  %vm39_vm0 = vcmask 261120  }
   0xf   :  { %v66_v2 = vld [vmem:[#allocation3 + $0x88] sm:$0xff]  ;;  %106 = vmatprep.subr.mxu1 %v74_v0  ;;  %v42_v3 = vld [vmem:[%s798_s0 + $0x8] sm:$0xff]  ;;  %v76_v9 = vld [vmem:[#allocation3 + $0xd8] sm:$0xff]  ;;  %574 = vmatprep.subr.mxu0 %v662_v40  ;;  %40 = vst.msk [vmem:[#allocation2] sm:$0xff] %vm39_vm0, %v662_v40  ;;  %vm663_vm1 = vmmov 0   ;;  %s664_s22 = smov [#allocation6]  }
  0x10   :  { %107 = vmatpush1.xpose.msra.mxu1 %v73_v1  ;;  %v65_v4 = vld [vmem:[#allocation3 + $0x80] sm:$0xff]  ;;  %146 = vmatprep.mubr.f32.mxu1 %v42_v3  ;;  %v58_v5 = vld [vmem:[#allocation3 + $0x48] sm:$0xff]  ;;  %v41_v10 = vld [vmem:[%s798_s0] sm:$0xff]  ;;  %s529_s23 = sshll.u32 %s664_s22, 4  ;;  %s530_s23 = int_to_ptr.vmem [resolvable:$true] %s529_s23 }
  0x11   :  { %108 = vmatprep.subr.mxu1 %v66_v2  ;;  %v57_v6 = vld [vmem:[#allocation3 + $0x40] sm:$0xff]  ;;  %v50_v7 = vld [vmem:[#allocation3 + $0x8] sm:$0xff]  ;;  %v75_v11 = vld [vmem:[#allocation3 + $0xd0] sm:$0xff]  ;;  %606 = vmatprep.mubr.msk.f32.mxu0 %vm663_vm1, %v662_v40  ;;  %s635_s24 = scalar_lea.vmem %s530_s23, 128  ;;  %p640_p6 = scmp.lt.s32.totalorder %s530_s23, %s530_s23 }
  0x12   :  { %v49_v8 = vld [vmem:[#allocation3] sm:$0xff]  ;;  %v44_v12 = vld [vmem:[%s798_s0 + $0x18] sm:$0xff]  ;;  %v68_v13 = vld [vmem:[#allocation3 + $0x98] sm:$0xff]  ;;  %p636_p5 = scmp.ne.s32.totalorder %s530_s23, %s635_s24  ;;  %p641_p7 = scmp.lt.s32.totalorder %s635_s24, %s635_s24 }
  0x13   :  { %v67_v14 = vld [vmem:[#allocation3 + $0x90] sm:$0xff]  ;;  %v60_v15 = vld [vmem:[#allocation3 + $0x58] sm:$0xff]  ;;  %v78_v19 = vld [vmem:[#allocation3 + $0xe8] sm:$0xff] }
  0x14   :  { %109 = vmatpush1.xpose.msra.mxu1 %v65_v4  ;;  %v59_v16 = vld [vmem:[#allocation3 + $0x50] sm:$0xff]  ;;  %v52_v17 = vld [vmem:[#allocation3 + $0x18] sm:$0xff]  ;;  %v43_v20 = vld [vmem:[%s798_s0 + $0x10] sm:$0xff]  ;;  %p642_p8 = por %p641_p7, %p640_p6 }
  0x15   :  { %110 = vmatprep.subr.mxu1 %v58_v5  ;;  %v51_v18 = vld [vmem:[#allocation3 + $0x10] sm:$0xff]  ;;  %v77_v21 = vld [vmem:[#allocation3 + $0xe0] sm:$0xff]  ;;  %v70_v23 = vld [vmem:[#allocation3 + $0xa8] sm:$0xff] }
  0x16   :  { %v46_v22 = vld [vmem:[%s798_s0 + $0x28] sm:$0xff]  ;;  %v62_v25 = vld [vmem:[#allocation3 + $0x68] sm:$0xff]  ;;  %v80_v29 = vld [vmem:[#allocation3 + $0xf8] sm:$0xff]  ;;  %p643_p9 = pnand %p642_p8, %p636_p5 }
  0x17   :  { %v69_v24 = vld [vmem:[#allocation3 + $0xa0] sm:$0xff]  ;;  %v54_v27 = vld [vmem:[#allocation3 + $0x28] sm:$0xff]  ;;  %v45_v30 = vld [vmem:[%s798_s0 + $0x20] sm:$0xff] }
  0x18   :  { %111 = vmatpush1.xpose.msra.mxu1 %v57_v6  ;;  %v61_v26 = vld [vmem:[#allocation3 + $0x60] sm:$0xff]  ;;  %v79_v31 = vld [vmem:[#allocation3 + $0xf0] sm:$0xff]  ;;  %v72_v33 = vld [vmem:[#allocation3 + $0xb8] sm:$0xff] }
  0x19   :  { %112 = vmatprep.subr.mxu1 %v50_v7  ;;  %v53_v28 = vld [vmem:[#allocation3 + $0x20] sm:$0xff]  ;;  %v48_v32 = vld [vmem:[%s798_s0 + $0x38] sm:$0xff]  ;;  %v64_v35 = vld [vmem:[#allocation3 + $0x78] sm:$0xff] }
  0x1a   :  { %v71_v34 = vld [vmem:[#allocation3 + $0xb0] sm:$0xff]  ;;  %v56_v37 = vld [vmem:[#allocation3 + $0x38] sm:$0xff]  ;;  %v47_v39 = vld [vmem:[%s798_s0 + $0x30] sm:$0xff] }
  0x1b   :  { %v63_v36 = vld [vmem:[#allocation3 + $0x70] sm:$0xff]  ;;  %v392_v42 = vld [vmem:[%s801_s3 + $0x70] sm:$0xff]  ;;  %v391_v43 = vld [vmem:[%s801_s3 + $0x68] sm:$0xff] }
  0x1c   :  { %113 = vmatpush1.xpose.msra.mxu1 %v49_v8  ;;  %v55_v38 = vld [vmem:[#allocation3 + $0x30] sm:$0xff]  ;;  %v390_v44 = vld [vmem:[%s801_s3 + $0x60] sm:$0xff]  ;;  %v388_v46 = vld [vmem:[%s801_s3 + $0x50] sm:$0xff] }
  0x1d   :  { %176 = vmatprep.subr.mxu1 %v76_v9  ;;  %v393_v41 = vld [vmem:[%s801_s3 + $0x78] sm:$0xff]  ;;  %v387_v47 = vld [vmem:[%s801_s3 + $0x48] sm:$0xff]  ;;  %v386_v48 = vld [vmem:[%s801_s3 + $0x40] sm:$0xff] }
  0x1e   :  { %575 = vmatpush3.xpose.msk.msra.mxu0 %vm39_vm0, %v393_v41  ;;  %v389_v45 = vld [vmem:[%s801_s3 + $0x58] sm:$0xff]  ;;  %v384_v50 = vld [vmem:[%s801_s3 + $0x30] sm:$0xff]  ;;  %v383_v51 = vld [vmem:[%s801_s3 + $0x28] sm:$0xff] }
  0x1f   :  { %147 = vmatmul.mubr.f32.vlgmr.msra.gmra.mxu1 %v41_v10  ;;  %576 = vmatprep.subr.mxu0 %v662_v40  ;;  %v385_v49 = vld [vmem:[%s801_s3 + $0x38] sm:$0xff]  ;;  %v382_v52 = vld [vmem:[%s801_s3 + $0x20] sm:$0xff]  ;;  %v380_v54 = vld [vmem:[%s801_s3 + $0x10] sm:$0xff] }
  0x20   :  { %177 = vmatpush1.xpose.msra.mxu1 %v75_v11  ;;  %216 = vmatprep.mubr.f32.mxu1 %v44_v12  ;;  %v381_v53 = vld [vmem:[%s801_s3 + $0x18] sm:$0xff]  ;;  %v379_v55 = vld [vmem:[%s801_s3 + $0x8] sm:$0xff]  ;;  %v378_v56 = vld [vmem:[%s801_s3] sm:$0xff] }
  0x21   :  { %178 = vmatprep.subr.mxu1 %v68_v13  ;;  %v81_v1 = vld [vmem:[#allocation2] sm:$0xff] }
  0x22   :  { %577 = vmatpush3.xpose.msk.msra.mxu0 %vm39_vm0, %v392_v42  ;;  %v538_v6 = vld [vmem:[%s800_s2] ss:$0 sm:$0xff] }
  0x23   :  { %578 = vmatprep.subr.mxu0 %v662_v40  ;;  %v539_v10 = vld [vmem:[%s802_s4] ss:$0 sm:$0xff] }
  0x24   :  { %179 = vmatpush1.xpose.msra.mxu1 %v67_v14 }
  0x25   :  { %180 = vmatprep.subr.mxu1 %v60_v15 }
  0x26   :  { %579 = vmatpush3.xpose.msk.msra.mxu0 %vm39_vm0, %v391_v43 }
  0x27   :  { %580 = vmatprep.subr.mxu0 %v662_v40 }
  0x28   :  { %181 = vmatpush1.xpose.msra.mxu1 %v59_v16 }
  0x29   :  { %182 = vmatprep.subr.mxu1 %v52_v17 }
  0x2a   :  { %581 = vmatpush3.xpose.msk.msra.mxu0 %vm39_vm0, %v390_v44 }
  0x2b   :  { %582 = vmatprep.subr.mxu0 %v662_v40 }
  0x2c   :  { %183 = vmatpush1.xpose.msra.mxu1 %v51_v18 }
  0x2d   :  { %246 = vmatprep.subr.mxu1 %v78_v19 }
  0x2e   :  { %583 = vmatpush3.xpose.msk.msra.mxu0 %vm39_vm0, %v389_v45 }
  0x2f   :  { %217 = vmatmul.mubr.f32.vlgmr.msra.gmra.mxu1 %v43_v20  ;;  %584 = vmatprep.subr.mxu0 %v662_v40 }
  0x30   :  { %247 = vmatpush1.xpose.msra.mxu1 %v77_v21  ;;  %286 = vmatprep.mubr.f32.mxu1 %v46_v22 }
  0x31   :  { %248 = vmatprep.subr.mxu1 %v70_v23 }
  0x32   :  { %585 = vmatpush3.xpose.msk.msra.mxu0 %vm39_vm0, %v388_v46 }
  0x33   :  { %586 = vmatprep.subr.mxu0 %v662_v40 }
  0x34   :  { %249 = vmatpush1.xpose.msra.mxu1 %v69_v24 }
  0x35   :  { %250 = vmatprep.subr.mxu1 %v62_v25 }
  0x36   :  { %587 = vmatpush3.xpose.msk.msra.mxu0 %vm39_vm0, %v387_v47 }
  0x37   :  { %588 = vmatprep.subr.mxu0 %v662_v40 }
  0x38   :  { %251 = vmatpush1.xpose.msra.mxu1 %v61_v26 }
  0x39   :  { %252 = vmatprep.subr.mxu1 %v54_v27 }
  0x3a   :  { %589 = vmatpush3.xpose.msk.msra.mxu0 %vm39_vm0, %v386_v48 }
  0x3b   :  { %590 = vmatprep.subr.mxu0 %v662_v40 }
  0x3c   :  { %253 = vmatpush1.xpose.msra.mxu1 %v53_v28 }
  0x3d   :  { %316 = vmatprep.subr.mxu1 %v80_v29 }
  0x3e   :  { %591 = vmatpush3.xpose.msk.msra.mxu0 %vm39_vm0, %v385_v49 }
  0x3f   :  { %287 = vmatmul.mubr.f32.vlgmr.msra.gmra.mxu1 %v45_v30  ;;  %592 = vmatprep.subr.mxu0 %v662_v40 }
  0x40   :  { %317 = vmatpush1.xpose.msra.mxu1 %v79_v31  ;;  %356 = vmatprep.mubr.f32.mxu1 %v48_v32 }
  0x41   :  { %318 = vmatprep.subr.mxu1 %v72_v33 }
  0x42   :  { %593 = vmatpush3.xpose.msk.msra.mxu0 %vm39_vm0, %v384_v50 }
  0x43   :  { %594 = vmatprep.subr.mxu0 %v662_v40 }
  0x44   :  { %319 = vmatpush1.xpose.msra.mxu1 %v71_v34 }
  0x45   :  { %320 = vmatprep.subr.mxu1 %v64_v35 }
  0x46   :  { %595 = vmatpush3.xpose.msk.msra.mxu0 %vm39_vm0, %v383_v51 }
  0x47   :  { %596 = vmatprep.subr.mxu0 %v662_v40 }
  0x48   :  { %321 = vmatpush1.xpose.msra.mxu1 %v63_v36 }
  0x49   :  { %322 = vmatprep.subr.mxu1 %v56_v37 }
  0x4a   :  { %597 = vmatpush3.xpose.msk.msra.mxu0 %vm39_vm0, %v382_v52 }
  0x4b   :  { %598 = vmatprep.subr.mxu0 %v662_v40 }
  0x4c   :  { %323 = vmatpush1.xpose.msra.mxu1 %v55_v38 }
  0x4e   :  { %599 = vmatpush3.xpose.msk.msra.mxu0 %vm39_vm0, %v381_v53 }
  0x4f   :  { %357 = vmatmul.mubr.f32.vlgmr.msra.gmra.mxu1 %v47_v39  ;;  %600 = vmatprep.subr.mxu0 %v662_v40 }
  0x52   :  { %601 = vmatpush3.xpose.msk.msra.mxu0 %vm39_vm0, %v380_v54 }
  0x53   :  { %602 = vmatprep.subr.mxu0 %v662_v40 }
  0x56   :  { %603 = vmatpush3.xpose.msk.msra.mxu0 %vm39_vm0, %v379_v55 }
  0x57   :  { %604 = vmatprep.subr.mxu0 %v662_v40 }
  0x5a   :  { %605 = vmatpush3.xpose.msk.msra.mxu0 %vm39_vm0, %v378_v56 }
  0xdf   :  { %v148_v57 = vpop.f32.mrf.mxu1 }
  0xe1   :  { %v150_v58 = vpop.f32.mrf.mxu1 }
  0xef   :  { %v218_v59 = vpop.f32.mrf.mxu1 }
  0xf0   :  { %v219_v63 = vadd.f32 %v218_v59, %v148_v57 }
  0xf1   :  { %v220_v60 = vpop.f32.mrf.mxu1 }
  0xff   :  { %v288_v61 = vpop.f32.mrf.mxu1 }
 0x100   :  { %v289_v0 = vadd.f32 %v288_v61, %v219_v63 }
 0x101   :  { %v290_v62 = vpop.f32.mrf.mxu1 }
 0x10f   :  { %v358_v2 = vpop.f32.mrf.mxu1 }
 0x110   :  { %v359_v3 = vadd.f32 %v358_v2, %v289_v0 }
 0x111   :  { %v360_v4 = vpop.f32.mrf.mxu1 }
 0x112   :  { %v362_v5 = vadd.f32 %v359_v3, %v81_v1 }
 0x114   :  { %364 = vst.msk [vmem:[#allocation2] sm:$0xff] %vm39_vm0, %v362_v5 }
 0x11b   :  { %v368_v7 = vld [vmem:[#allocation2] sm:$0xff] }
 0x11c   :  { %v376_v8 = vadd.f32 %v538_v6, %v368_v7 }
 0x11e   :  { %v377_v9 = vmax.f32 %v376_v8, 0.0 }
 0x120   :  { %607 = vmatmul.mubr.msk.f32.vlgmr.msra.gmra.mxu0 %vm39_vm0, %v377_v9 }
 0x1e0   :  { %v518_v11 = vpop.f32.mrf.mxu0 }
 0x1e1   :  { %v519_v12 = vadd.f32 %v539_v10, %v518_v11 }
 0x1e2   :  { %v608_v13 = vpop.f32.mrf.mxu0 }
 0x1e3   :  { %522 = vst [vmem:[#allocation6] sm:$0xff] %v519_v12 }
 0x1e4   :  { %646 = shalt.err (!%p643_p9)
}
 0x1e5   :  { %532 = dma.vmem_to_hbm [thread:$0]  %s530_s23, 128, %s803_s5, [#allocation5]  }
 0x1e6   :  { %657 = dma.done.wait [#allocation5], 128  }
 0x1e7   :  { %658 = vsyncadd [#allocation5], 4294967168 }
 0x1e8   :  { %536 = vsyncpa [#allocation4], 1 }
 0x1e9   :  { %537 = vsyncpa [#allocation5], 1 }

// kernel: tpu_custom_call.1
= control target key start
LH: loop header
LB: loop body
LE: loop exit
PB: predicated region body
PF: predicated region fallthrough
CT: control target
= control target key end

     0   :  { %10 = vsyncpa [#allocation4], 0  ;;  %s798_s0 = inlined_call_operand.vmem [shape: f32[8,1024], index: 0, kind: input, shape index: {}]   ;;  %s799_s1 = inlined_call_operand.hbm [shape: f32[32,1024], index: 1, kind: input, shape index: {}]   ;;  %s800_s2 = inlined_call_operand.vmem [shape: f32[1,32], index: 2, kind: input, shape index: {}]   ;;  %s801_s3 = inlined_call_operand.vmem [shape: f32[128,32], index: 3, kind: input, shape index: {}]   ;;  %s802_s4 = inlined_call_operand.vmem [shape: f32[1,128], index: 4, kind: input, shape index: {}]   ;;  %s803_s5 = inlined_call_operand.hbm [shape: f32[8,128], index: 5, kind: output, shape index: {}]  }
   0x1   :  { %11 = vsyncpa [#allocation5], 0  ;;  %s659_s18 = smov [#allocation3]  }
   0x2   :  { %s19_s19 = sshll.u32 %s659_s18, 4  ;;  %s20_s19 = int_to_ptr.vmem [resolvable:$true] %s19_s19 }
   0x3   :  { %s623_s20 = scalar_lea.vmem %s20_s19, 4096  ;;  %p628_p1 = scmp.lt.s32.totalorder %s20_s19, %s20_s19 }
   0x4   :  { %p624_p0 = scmp.ne.s32.totalorder %s20_s19, %s623_s20  ;;  %p629_p2 = scmp.lt.s32.totalorder %s623_s20, %s623_s20 }
   0x6   :  { %p630_p3 = por %p629_p2, %p628_p1 }
   0x8   :  { %p631_p4 = pnand %p630_p3, %p624_p0 }
   0xa   :  { %634 = shalt.err (!%p631_p4)
}
   0xb   :  { %s660_s21 = smov 1024   ;;  %s661_s22 = smov 64  }
   0xc   :  { %25 = dma.hbm_to_vmem [thread:$0]  %s799_s1, 4096, %s20_s19, [#allocation4], %s660_s21, %s660_s21, %s661_s22  }
   0xd   :  { %655 = dma.done.wait [#allocation4], 4096  }
   0xe   :  { %656 = vsyncadd [#allocation4], 4294963200  ;;  %v74_v0 = vld [vmem:[#allocation3 + $0xc8] sm:$0xff]  ;;  %v73_v1 = vld [vmem:[#allocation3 + $0xc0] sm:$0xff]  ;;  %v662_v40 = vmov 0.0   ;;  %vm39_vm0 = vcmask 261120  }
   0xf   :  { %v66_v2 = vld [vmem:[#allocation3 + $0x88] sm:$0xff]  ;;  %106 = vmatprep.subr.mxu1 %v74_v0  ;;  %v42_v3 = vld [vmem:[%s798_s0 + $0x8] sm:$0xff]  ;;  %v76_v9 = vld [vmem:[#allocation3 + $0xd8] sm:$0xff]  ;;  %574 = vmatprep.subr.mxu0 %v662_v40  ;;  %40 = vst.msk [vmem:[#allocation2] sm:$0xff] %vm39_vm0, %v662_v40  ;;  %vm663_vm1 = vmmov 0   ;;  %s664_s22 = smov [#allocation6]  }
  0x10   :  { %107 = vmatpush1.xpose.msra.mxu1 %v73_v1  ;;  %v65_v4 = vld [vmem:[#allocation3 + $0x80] sm:$0xff]  ;;  %146 = vmatprep.mubr.f32.mxu1 %v42_v3  ;;  %v58_v5 = vld [vmem:[#allocation3 + $0x48] sm:$0xff]  ;;  %v41_v10 = vld [vmem:[%s798_s0] sm:$0xff]  ;;  %s529_s23 = sshll.u32 %s664_s22, 4  ;;  %s530_s23 = int_to_ptr.vmem [resolvable:$true] %s529_s23 }
  0x11   :  { %108 = vmatprep.subr.mxu1 %v66_v2  ;;  %v57_v6 = vld [vmem:[#allocation3 + $0x40] sm:$0xff]  ;;  %v50_v7 = vld [vmem:[#allocation3 + $0x8] sm:$0xff]  ;;  %v75_v11 = vld [vmem:[#allocation3 + $0xd0] sm:$0xff]  ;;  %606 = vmatprep.mubr.msk.f32.mxu0 %vm663_vm1, %v662_v40  ;;  %s635_s24 = scalar_lea.vmem %s530_s23, 128  ;;  %p640_p6 = scmp.lt.s32.totalorder %s530_s23, %s530_s23 }
  0x12   :  { %v49_v8 = vld [vmem:[#allocation3] sm:$0xff]  ;;  %v44_v12 = vld [vmem:[%s798_s0 + $0x18] sm:$0xff]  ;;  %v68_v13 = vld [vmem:[#allocation3 + $0x98] sm:$0xff]  ;;  %p636_p5 = scmp.ne.s32.totalorder %s530_s23, %s635_s24  ;;  %p641_p7 = scmp.lt.s32.totalorder %s635_s24, %s635_s24 }
  0x13   :  { %v67_v14 = vld [vmem:[#allocation3 + $0x90] sm:$0xff]  ;;  %v60_v15 = vld [vmem:[#allocation3 + $0x58] sm:$0xff]  ;;  %v78_v19 = vld [vmem:[#allocation3 + $0xe8] sm:$0xff] }
  0x14   :  { %109 = vmatpush1.xpose.msra.mxu1 %v65_v4  ;;  %v59_v16 = vld [vmem:[#allocation3 + $0x50] sm:$0xff]  ;;  %v52_v17 = vld [vmem:[#allocation3 + $0x18] sm:$0xff]  ;;  %v43_v20 = vld [vmem:[%s798_s0 + $0x10] sm:$0xff]  ;;  %p642_p8 = por %p641_p7, %p640_p6 }
  0x15   :  { %110 = vmatprep.subr.mxu1 %v58_v5  ;;  %v51_v18 = vld [vmem:[#allocation3 + $0x10] sm:$0xff]  ;;  %v77_v21 = vld [vmem:[#allocation3 + $0xe0] sm:$0xff]  ;;  %v70_v23 = vld [vmem:[#allocation3 + $0xa8] sm:$0xff] }
  0x16   :  { %v46_v22 = vld [vmem:[%s798_s0 + $0x28] sm:$0xff]  ;;  %v62_v25 = vld [vmem:[#allocation3 + $0x68] sm:$0xff]  ;;  %v80_v29 = vld [vmem:[#allocation3 + $0xf8] sm:$0xff]  ;;  %p643_p9 = pnand %p642_p8, %p636_p5 }
  0x17   :  { %v69_v24 = vld [vmem:[#allocation3 + $0xa0] sm:$0xff]  ;;  %v54_v27 = vld [vmem:[#allocation3 + $0x28] sm:$0xff]  ;;  %v45_v30 = vld [vmem:[%s798_s0 + $0x20] sm:$0xff] }
  0x18   :  { %111 = vmatpush1.xpose.msra.mxu1 %v57_v6  ;;  %v61_v26 = vld [vmem:[#allocation3 + $0x60] sm:$0xff]  ;;  %v79_v31 = vld [vmem:[#allocation3 + $0xf0] sm:$0xff]  ;;  %v72_v33 = vld [vmem:[#allocation3 + $0xb8] sm:$0xff] }
  0x19   :  { %112 = vmatprep.subr.mxu1 %v50_v7  ;;  %v53_v28 = vld [vmem:[#allocation3 + $0x20] sm:$0xff]  ;;  %v48_v32 = vld [vmem:[%s798_s0 + $0x38] sm:$0xff]  ;;  %v64_v35 = vld [vmem:[#allocation3 + $0x78] sm:$0xff] }
  0x1a   :  { %v71_v34 = vld [vmem:[#allocation3 + $0xb0] sm:$0xff]  ;;  %v56_v37 = vld [vmem:[#allocation3 + $0x38] sm:$0xff]  ;;  %v47_v39 = vld [vmem:[%s798_s0 + $0x30] sm:$0xff] }
  0x1b   :  { %v63_v36 = vld [vmem:[#allocation3 + $0x70] sm:$0xff]  ;;  %v392_v42 = vld [vmem:[%s801_s3 + $0x70] sm:$0xff]  ;;  %v391_v43 = vld [vmem:[%s801_s3 + $0x68] sm:$0xff] }
  0x1c   :  { %113 = vmatpush1.xpose.msra.mxu1 %v49_v8  ;;  %v55_v38 = vld [vmem:[#allocation3 + $0x30] sm:$0xff]  ;;  %v390_v44 = vld [vmem:[%s801_s3 + $0x60] sm:$0xff]  ;;  %v388_v46 = vld [vmem:[%s801_s3 + $0x50] sm:$0xff] }
  0x1d   :  { %176 = vmatprep.subr.mxu1 %v76_v9  ;;  %v393_v41 = vld [vmem:[%s801_s3 + $0x78] sm:$0xff]  ;;  %v387_v47 = vld [vmem:[%s801_s3 + $0x48] sm:$0xff]  ;;  %v386_v48 = vld [vmem:[%s801_s3 + $0x40] sm:$0xff] }
  0x1e   :  { %575 = vmatpush3.xpose.msk.msra.mxu0 %vm39_vm0, %v393_v41  ;;  %v389_v45 = vld [vmem:[%s801_s3 + $0x58] sm:$0xff]  ;;  %v384_v50 = vld [vmem:[%s801_s3 + $0x30] sm:$0xff]  ;;  %v383_v51 = vld [vmem:[%s801_s3 + $0x28] sm:$0xff] }
  0x1f   :  { %147 = vmatmul.mubr.f32.vlgmr.msra.gmra.mxu1 %v41_v10  ;;  %576 = vmatprep.subr.mxu0 %v662_v40  ;;  %v385_v49 = vld [vmem:[%s801_s3 + $0x38] sm:$0xff]  ;;  %v382_v52 = vld [vmem:[%s801_s3 + $0x20] sm:$0xff]  ;;  %v380_v54 = vld [vmem:[%s801_s3 + $0x10] sm:$0xff] }
  0x20   :  { %177 = vmatpush1.xpose.msra.mxu1 %v75_v11  ;;  %216 = vmatprep.mubr.f32.mxu1 %v44_v12  ;;  %v381_v53 = vld [vmem:[%s801_s3 + $0x18] sm:$0xff]  ;;  %v379_v55 = vld [vmem:[%s801_s3 + $0x8] sm:$0xff]  ;;  %v378_v56 = vld [vmem:[%s801_s3] sm:$0xff] }
  0x21   :  { %178 = vmatprep.subr.mxu1 %v68_v13  ;;  %v81_v1 = vld [vmem:[#allocation2] sm:$0xff] }
  0x22   :  { %577 = vmatpush3.xpose.msk.msra.mxu0 %vm39_vm0, %v392_v42  ;;  %v538_v6 = vld [vmem:[%s800_s2] ss:$0 sm:$0xff] }
  0x23   :  { %578 = vmatprep.subr.mxu0 %v662_v40  ;;  %v539_v10 = vld [vmem:[%s802_s4] ss:$0 sm:$0xff] }
  0x24   :  { %179 = vmatpush1.xpose.msra.mxu1 %v67_v14 }
  0x25   :  { %180 = vmatprep.subr.mxu1 %v60_v15 }
  0x26   :  { %579 = vmatpush3.xpose.msk.msra.mxu0 %vm39_vm0, %v391_v43 }
  0x27   :  { %580 = vmatprep.subr.mxu0 %v662_v40 }
  0x28   :  { %181 = vmatpush1.xpose.msra.mxu1 %v59_v16 }
  0x29   :  { %182 = vmatprep.subr.mxu1 %v52_v17 }
  0x2a   :  { %581 = vmatpush3.xpose.msk.msra.mxu0 %vm39_vm0, %v390_v44 }
  0x2b   :  { %582 = vmatprep.subr.mxu0 %v662_v40 }
  0x2c   :  { %183 = vmatpush1.xpose.msra.mxu1 %v51_v18 }
  0x2d   :  { %246 = vmatprep.subr.mxu1 %v78_v19 }
  0x2e   :  { %583 = vmatpush3.xpose.msk.msra.mxu0 %vm39_vm0, %v389_v45 }
  0x2f   :  { %217 = vmatmul.mubr.f32.vlgmr.msra.gmra.mxu1 %v43_v20  ;;  %584 = vmatprep.subr.mxu0 %v662_v40 }
  0x30   :  { %247 = vmatpush1.xpose.msra.mxu1 %v77_v21  ;;  %286 = vmatprep.mubr.f32.mxu1 %v46_v22 }
  0x31   :  { %248 = vmatprep.subr.mxu1 %v70_v23 }
  0x32   :  { %585 = vmatpush3.xpose.msk.msra.mxu0 %vm39_vm0, %v388_v46 }
  0x33   :  { %586 = vmatprep.subr.mxu0 %v662_v40 }
  0x34   :  { %249 = vmatpush1.xpose.msra.mxu1 %v69_v24 }
  0x35   :  { %250 = vmatprep.subr.mxu1 %v62_v25 }
  0x36   :  { %587 = vmatpush3.xpose.msk.msra.mxu0 %vm39_vm0, %v387_v47 }
  0x37   :  { %588 = vmatprep.subr.mxu0 %v662_v40 }
  0x38   :  { %251 = vmatpush1.xpose.msra.mxu1 %v61_v26 }
  0x39   :  { %252 = vmatprep.subr.mxu1 %v54_v27 }
  0x3a   :  { %589 = vmatpush3.xpose.msk.msra.mxu0 %vm39_vm0, %v386_v48 }
  0x3b   :  { %590 = vmatprep.subr.mxu0 %v662_v40 }
  0x3c   :  { %253 = vmatpush1.xpose.msra.mxu1 %v53_v28 }
  0x3d   :  { %316 = vmatprep.subr.mxu1 %v80_v29 }
  0x3e   :  { %591 = vmatpush3.xpose.msk.msra.mxu0 %vm39_vm0, %v385_v49 }
  0x3f   :  { %287 = vmatmul.mubr.f32.vlgmr.msra.gmra.mxu1 %v45_v30  ;;  %592 = vmatprep.subr.mxu0 %v662_v40 }
  0x40   :  { %317 = vmatpush1.xpose.msra.mxu1 %v79_v31  ;;  %356 = vmatprep.mubr.f32.mxu1 %v48_v32 }
  0x41   :  { %318 = vmatprep.subr.mxu1 %v72_v33 }
  0x42   :  { %593 = vmatpush3.xpose.msk.msra.mxu0 %vm39_vm0, %v384_v50 }
  0x43   :  { %594 = vmatprep.subr.mxu0 %v662_v40 }
  0x44   :  { %319 = vmatpush1.xpose.msra.mxu1 %v71_v34 }
  0x45   :  { %320 = vmatprep.subr.mxu1 %v64_v35 }
  0x46   :  { %595 = vmatpush3.xpose.msk.msra.mxu0 %vm39_vm0, %v383_v51 }
  0x47   :  { %596 = vmatprep.subr.mxu0 %v662_v40 }
  0x48   :  { %321 = vmatpush1.xpose.msra.mxu1 %v63_v36 }
  0x49   :  { %322 = vmatprep.subr.mxu1 %v56_v37 }
  0x4a   :  { %597 = vmatpush3.xpose.msk.msra.mxu0 %vm39_vm0, %v382_v52 }
  0x4b   :  { %598 = vmatprep.subr.mxu0 %v662_v40 }
  0x4c   :  { %323 = vmatpush1.xpose.msra.mxu1 %v55_v38 }
  0x4e   :  { %599 = vmatpush3.xpose.msk.msra.mxu0 %vm39_vm0, %v381_v53 }
  0x4f   :  { %357 = vmatmul.mubr.f32.vlgmr.msra.gmra.mxu1 %v47_v39  ;;  %600 = vmatprep.subr.mxu0 %v662_v40 }
  0x52   :  { %601 = vmatpush3.xpose.msk.msra.mxu0 %vm39_vm0, %v380_v54 }
  0x53   :  { %602 = vmatprep.subr.mxu0 %v662_v40 }
  0x56   :  { %603 = vmatpush3.xpose.msk.msra.mxu0 %vm39_vm0, %v379_v55 }
  0x57   :  { %604 = vmatprep.subr.mxu0 %v662_v40 }
  0x5a   :  { %605 = vmatpush3.xpose.msk.msra.mxu0 %vm39_vm0, %v378_v56 }
  0xdf   :  { %v148_v57 = vpop.f32.mrf.mxu1 }
  0xe1   :  { %v150_v58 = vpop.f32.mrf.mxu1 }
  0xef   :  { %v218_v59 = vpop.f32.mrf.mxu1 }
  0xf0   :  { %v219_v63 = vadd.f32 %v218_v59, %v148_v57 }
  0xf1   :  { %v220_v60 = vpop.f32.mrf.mxu1 }
  0xff   :  { %v288_v61 = vpop.f32.mrf.mxu1 }
 0x100   :  { %v289_v0 = vadd.f32 %v288_v61, %v219_v63 }
 0x101   :  { %v290_v62 = vpop.f32.mrf.mxu1 }
 0x10f   :  { %v358_v2 = vpop.f32.mrf.mxu1 }
 0x110   :  { %v359_v3 = vadd.f32 %v358_v2, %v289_v0 }
 0x111   :  { %v360_v4 = vpop.f32.mrf.mxu1 }
 0x112   :  { %v362_v5 = vadd.f32 %v359_v3, %v81_v1 }
 0x114   :  { %364 = vst.msk [vmem:[#allocation2] sm:$0xff] %vm39_vm0, %v362_v5 }
 0x11b   :  { %v368_v7 = vld [vmem:[#allocation2] sm:$0xff] }
 0x11c   :  { %v376_v8 = vadd.f32 %v538_v6, %v368_v7 }
 0x11e   :  { %v377_v9 = vmax.f32 %v376_v8, 0.0 }
 0x120   :  { %607 = vmatmul.mubr.msk.f32.vlgmr.msra.gmra.mxu0 %vm39_vm0, %v377_v9 }
 0x1e0   :  { %v518_v11 = vpop.f32.mrf.mxu0 }
 0x1e1   :  { %v519_v12 = vadd.f32 %v539_v10, %v518_v11 }
 0x1e2   :  { %v608_v13 = vpop.f32.mrf.mxu0 }
 0x1e3   :  { %522 = vst [vmem:[#allocation6] sm:$0xff] %v519_v12 }
 0x1e4   :  { %646 = shalt.err (!%p643_p9)
}
 0x1e5   :  { %532 = dma.vmem_to_hbm [thread:$0]  %s530_s23, 128, %s803_s5, [#allocation5]  }
 0x1e6   :  { %657 = dma.done.wait [#allocation5], 128  }
 0x1e7   :  { %658 = vsyncadd [#allocation5], 4294967168 }
 0x1e8   :  { %536 = vsyncpa [#allocation4], 1 }
 0x1e9   :  { %537 = vsyncpa [#allocation5], 1 }

</bundles_post_ra>
